<compile_context>
chip_gen: v7x
topology: tpu7x:2x2x1
jax: 0.10.0
libtpu: 0.0.40
codegen_flags: <defaults>
</compile_context>

<pallas_src>
import jax
import jax.numpy as jnp
from jax.experimental import pallas as pl
from jax.experimental.pallas import tpu as pltpu


def _apply_mask_kernel(x_ref, m_ref, o_ref):
    # x_ref: (TN, L, C), m_ref: (TN, 1, C) -> broadcast over the L (sublane) axis.
    o_ref[...] = x_ref[...] * m_ref[...]


def _dropout_mask(key, rows, channels, drop_prob, dtype):
    """(rows, 1, channels) mask with values in {0, 1/(1-p)} in `dtype`."""
    keep_scale = jnp.float32(1.0 / (1.0 - drop_prob))
    u = jax.random.uniform(key, (rows, 1, channels), dtype=jnp.float32)
    mask = jnp.where(u >= jnp.float32(drop_prob), keep_scale, jnp.float32(0.0))
    return mask.astype(dtype)


def equivariant_dropout_sh(
    x,
    drop_prob,
    *,
    key,
    training=True,
    drop_graph=False,
    batch=None,
    num_graphs=None,
    block_nodes=None,
):
    """JAX/Pallas equivalent of EquivariantDropoutArraySphericalHarmonics.forward."""
    if (not training) or drop_prob == 0.0:
        return x
    assert x.ndim == 3, "expected x of shape (N, L, C)"
    N, L, C = x.shape

    if drop_prob >= 1.0:  # degenerate case: everything dropped
        return jnp.zeros_like(x)

    # --- build the (N, 1, C) channel mask (hoisted out of the kernel) ---
    if drop_graph:
        assert batch is not None
        if num_graphs is None:
            num_graphs = int(batch.max()) + 1
        mask = _dropout_mask(key, num_graphs, C, float(drop_prob), x.dtype)
        mask = mask[batch]  # (N, 1, C): nodes of the same graph share a mask
    else:
        mask = _dropout_mask(key, N, C, float(drop_prob), x.dtype)

    # --- tile many nodes per grid step; each x block ~2 MiB ---
    itemsize = jnp.dtype(x.dtype).itemsize
    per_node_bytes = max(1, L * C * itemsize)
    if block_nodes is None:
        block_nodes = max(1, min(N, (2 * 1024 * 1024) // per_node_bytes))
    tn = int(block_nodes)
    grid = (pl.cdiv(N, tn),)

    cost = pl.CostEstimate(
        flops=N * L * C,
        transcendentals=0,
        bytes_accessed=(2 * N * L * C + N * C) * itemsize,
    )

    out = pl.pallas_call(
        _apply_mask_kernel,
        out_shape=jax.ShapeDtypeStruct((N, L, C), x.dtype),
        grid=grid,
        in_specs=[
            pl.BlockSpec((tn, L, C), lambda i: (i, 0, 0)),
            pl.BlockSpec((tn, 1, C), lambda i: (i, 0, 0)),
        ],
        out_specs=pl.BlockSpec((tn, L, C), lambda i: (i, 0, 0)),
        compiler_params=pltpu.CompilerParams(
            dimension_semantics=("parallel",),
            vmem_limit_bytes=32 * 1024 * 1024,
        ),
        cost_estimate=cost,
    )(x, mask)
    return out


if __name__ == "__main__":
    key = jax.random.PRNGKey(0)
    # Small shapes consistent with the module: N nodes, L=(lmax+1)^2=9, C channels.
    N, L, C = 8, 9, 32
    drop_prob = 0.3

    kx, km1, km2 = jax.random.split(key, 3)
    x = jax.random.normal(kx, (N, L, C), dtype=jnp.float32)
    batch = jnp.array([0, 0, 0, 1, 1, 2, 2, 2], dtype=jnp.int32)  # node -> graph id

    # --- node-level dropout (drop_graph=False) ---
    out = jax.block_until_ready(
        equivariant_dropout_sh(x, drop_prob, key=km1, training=True, drop_graph=False)
    )
    assert out.shape == x.shape and out.dtype == x.dtype
    mask_ref = _dropout_mask(km1, N, C, drop_prob, x.dtype)  # same key/logic as wrapper
    assert bool(jnp.allclose(out, x * mask_ref, atol=1e-6, rtol=1e-6)), \
        "node-level dropout does not match reference"
    keep_scale = 1.0 / (1.0 - drop_prob)
    mvals = mask_ref[:, 0, :]
    assert bool(
        jnp.all(jnp.minimum(jnp.abs(mvals), jnp.abs(mvals - keep_scale)) < 1e-6)
    ), "mask values not in {0, 1/(1-p)}"

    # --- graph-level dropout (drop_graph=True) ---
    out_g = jax.block_until_ready(
        equivariant_dropout_sh(
            x, drop_prob, key=km2, training=True, drop_graph=True, batch=batch
        )
    )
    G = int(batch.max()) + 1
    mask_g = _dropout_mask(km2, G, C, drop_prob, x.dtype)
    assert bool(jnp.allclose(out_g, x * mask_g[batch], atol=1e-6, rtol=1e-6)), \
        "graph-level dropout does not match reference"
    # nodes of the same graph use the identical per-channel mask by construction
    assert bool(jnp.allclose(mask_g[batch][0], mask_g[batch][2]))
    assert bool(jnp.allclose(mask_g[batch][3], mask_g[batch][4]))
    assert bool(jnp.allclose(mask_g[batch][5], mask_g[batch][7]))

    # --- eval mode / p == 0 are identity ---
    assert bool(
        jnp.array_equal(equivariant_dropout_sh(x, drop_prob, key=km1, training=False), x)
    )
    assert bool(jnp.array_equal(equivariant_dropout_sh(x, 0.0, key=km1, training=True), x))

    print("KERNEL_OK")
</pallas_src>

<mosaic_0001>
module attributes {stable_mosaic.version = 11 : i64} {
  func.func @_apply_mask_kernel(%arg0: i32, %arg1: memref<8x9x32xf32, #tpu.memory_space<vmem>>, %arg2: memref<8x1x32xf32, #tpu.memory_space<vmem>>, %arg3: memref<8x9x32xf32, #tpu.memory_space<vmem>>) attributes {dimension_semantics = [#tpu.dimension_semantics<parallel>], iteration_bounds = array<i64: 1>, scalar_prefetch = 0 : i64, scratch_operands = 0 : i64, tpu.core_type = #tpu.core_type<tc>, window_params = [{transform_indices = @transform_0, window_bounds = array<i64: 8, 9, 32>}, {transform_indices = @transform_1, window_bounds = array<i64: 8, 1, 32>}, {transform_indices = @transform_2, window_bounds = array<i64: 8, 9, 32>}]} {
    %c0 = arith.constant 0 : index
    %c0_0 = arith.constant 0 : index
    %c0_1 = arith.constant 0 : index
    %0 = vector.load %arg1[%c0, %c0_0, %c0_1] : memref<8x9x32xf32, #tpu.memory_space<vmem>>, vector<8x9x32xf32>
    %c0_2 = arith.constant 0 : index
    %c0_3 = arith.constant 0 : index
    %c0_4 = arith.constant 0 : index
    %1 = vector.load %arg2[%c0_2, %c0_3, %c0_4] : memref<8x1x32xf32, #tpu.memory_space<vmem>>, vector<8x1x32xf32>
    %2 = vector.broadcast %1 : vector<8x1x32xf32> to vector<8x9x32xf32>
    %3 = arith.mulf %0, %2 : vector<8x9x32xf32>
    %c0_5 = arith.constant 0 : index
    %c0_6 = arith.constant 0 : index
    %c0_7 = arith.constant 0 : index
    %4 = vector.load %arg3[%c0_5, %c0_6, %c0_7] : memref<8x9x32xf32, #tpu.memory_space<vmem>>, vector<8x9x32xf32>
    tpu.vector_store %arg3[%c0_5, %c0_6, %c0_7], %3 {strides = array<i32>} : memref<8x9x32xf32, #tpu.memory_space<vmem>>, vector<8x9x32xf32>,
    return
  }
  func.func @transform_0(%arg0: i32) -> (i32, i32, i32) {
    %c0_i32 = arith.constant 0 : i32
    %c0_i32_0 = arith.constant 0 : i32
    %c0_i32_1 = arith.constant 0 : i32
    return %arg0, %c0_i32, %c0_i32_0 : i32, i32, i32
  }
  func.func @transform_1(%arg0: i32) -> (i32, i32, i32) {
    %c0_i32 = arith.constant 0 : i32
    %c0_i32_0 = arith.constant 0 : i32
    %c0_i32_1 = arith.constant 0 : i32
    return %arg0, %c0_i32, %c0_i32_0 : i32, i32, i32
  }
  func.func @transform_2(%arg0: i32) -> (i32, i32, i32) {
    %c0_i32 = arith.constant 0 : i32
    %c0_i32_0 = arith.constant 0 : i32
    %c0_i32_1 = arith.constant 0 : i32
    return %arg0, %c0_i32, %c0_i32_0 : i32, i32, i32
  }
}

</mosaic_0001>

<bundles_post_ra>
// kernel: tpu_custom_call.1
= control target key start
LH: loop header
LB: loop body
LE: loop exit
PB: predicated region body
PF: predicated region fallthrough
CT: control target
= control target key end

     0   :  { %vm99_vm0 = vcmask 261120   ;;  %vm101_vm1 = vcmask 253952   ;;  %s280_s0 = inlined_call_operand.vmem [shape: f32[8,9,32], index: 0, kind: input, shape index: {}]   ;;  %s281_s1 = inlined_call_operand.vmem [shape: f32[8,1,32], index: 1, kind: input, shape index: {}]   ;;  %s282_s2 = inlined_call_operand.vmem [shape: f32[8,9,32], index: 2, kind: output, shape index: {}]  }
   0x1   :  { %v11_v0 = vld [vmem:[%s280_s0] sm:$0xff]  ;;  %v12_v2 = vld [vmem:[%s280_s0 + $0x8] sm:$0x1]  ;;  %v13_v5 = vld [vmem:[%s280_s0 + $0x10] sm:$0xff] }
   0x2   :  { %v121_v1 = vld [vmem:[%s281_s1] ss:$0 sm:$0xff]  ;;  %v122_v6 = vld [vmem:[%s281_s1 + $0x1] ss:$0 sm:$0xff]  ;;  %v14_v7 = vld [vmem:[%s280_s0 + $0x18] sm:$0x1] }
   0x3   :  { %v83_v3 = vmul.f32 %v121_v1, %v11_v0  ;;  %v84_v4 = vmul.f32 %v121_v1, %v12_v2  ;;  %v85_v8 = vmul.f32 %v122_v6, %v13_v5  ;;  %v86_v9 = vmul.f32 %v122_v6, %v14_v7  ;;  %v15_v10 = vld [vmem:[%s280_s0 + $0x20] sm:$0xff]  ;;  %v16_v12 = vld [vmem:[%s280_s0 + $0x28] sm:$0x1]  ;;  %v17_v15 = vld [vmem:[%s280_s0 + $0x30] sm:$0xff] }
   0x4   :  { %v123_v11 = vld [vmem:[%s281_s1 + $0x2] ss:$0 sm:$0xff]  ;;  %v124_v16 = vld [vmem:[%s281_s1 + $0x3] ss:$0 sm:$0xff]  ;;  %v18_v17 = vld [vmem:[%s280_s0 + $0x38] sm:$0x1] }
   0x5   :  { %100 = vst.msk [vmem:[%s282_s2] sm:$0xff] %vm99_vm0, %v83_v3  ;;  %v87_v13 = vmul.f32 %v123_v11, %v15_v10  ;;  %v88_v14 = vmul.f32 %v123_v11, %v16_v12  ;;  %103 = vst.msk [vmem:[%s282_s2 + $0x10] sm:$0xff] %vm99_vm0, %v85_v8  ;;  %v89_v18 = vmul.f32 %v124_v16, %v17_v15  ;;  %v19_v20 = vld [vmem:[%s280_s0 + $0x40] sm:$0xff]  ;;  %v20_v22 = vld [vmem:[%s280_s0 + $0x48] sm:$0x1] }
   0x6   :  { %102 = vst.msk [vmem:[%s282_s2 + $0x8] sm:$0x1] %vm101_vm1, %v84_v4  ;;  %104 = vst.msk [vmem:[%s282_s2 + $0x18] sm:$0x1] %vm101_vm1, %v86_v9  ;;  %v90_v19 = vmul.f32 %v124_v16, %v18_v17  ;;  %v125_v21 = vld [vmem:[%s281_s1 + $0x4] ss:$0 sm:$0xff] }
   0x7   :  { %105 = vst.msk [vmem:[%s282_s2 + $0x20] sm:$0xff] %vm99_vm0, %v87_v13  ;;  %v91_v23 = vmul.f32 %v125_v21, %v19_v20  ;;  %v92_v24 = vmul.f32 %v125_v21, %v20_v22  ;;  %v21_v25 = vld [vmem:[%s280_s0 + $0x50] sm:$0xff]  ;;  %v126_v26 = vld [vmem:[%s281_s1 + $0x5] ss:$0 sm:$0xff]  ;;  %v22_v27 = vld [vmem:[%s280_s0 + $0x58] sm:$0x1] }
   0x8   :  { %106 = vst.msk [vmem:[%s282_s2 + $0x28] sm:$0x1] %vm101_vm1, %v88_v14  ;;  %108 = vst.msk [vmem:[%s282_s2 + $0x38] sm:$0x1] %vm101_vm1, %v90_v19  ;;  %v93_v28 = vmul.f32 %v126_v26, %v21_v25  ;;  %v94_v29 = vmul.f32 %v126_v26, %v22_v27  ;;  %v23_v30 = vld [vmem:[%s280_s0 + $0x60] sm:$0xff]  ;;  %v25_v35 = vld [vmem:[%s280_s0 + $0x70] sm:$0xff] }
   0x9   :  { %107 = vst.msk [vmem:[%s282_s2 + $0x30] sm:$0xff] %vm99_vm0, %v89_v18  ;;  %v127_v31 = vld [vmem:[%s281_s1 + $0x6] ss:$0 sm:$0xff]  ;;  %v24_v32 = vld [vmem:[%s280_s0 + $0x68] sm:$0x1]  ;;  %109 = vst.msk [vmem:[%s282_s2 + $0x40] sm:$0xff] %vm99_vm0, %v91_v23 }
   0xa   :  { %110 = vst.msk [vmem:[%s282_s2 + $0x48] sm:$0x1] %vm101_vm1, %v92_v24  ;;  %v95_v33 = vmul.f32 %v127_v31, %v23_v30  ;;  %v96_v34 = vmul.f32 %v127_v31, %v24_v32  ;;  %v128_v36 = vld [vmem:[%s281_s1 + $0x7] ss:$0 sm:$0xff]  ;;  %v26_v37 = vld [vmem:[%s280_s0 + $0x78] sm:$0x1] }
   0xb   :  { %111 = vst.msk [vmem:[%s282_s2 + $0x50] sm:$0xff] %vm99_vm0, %v93_v28  ;;  %v97_v38 = vmul.f32 %v128_v36, %v25_v35  ;;  %v98_v39 = vmul.f32 %v128_v36, %v26_v37 }
   0xc   :  { %112 = vst.msk [vmem:[%s282_s2 + $0x58] sm:$0x1] %vm101_vm1, %v94_v29  ;;  %114 = vst.msk [vmem:[%s282_s2 + $0x68] sm:$0x1] %vm101_vm1, %v96_v34 }
   0xd   :  { %113 = vst.msk [vmem:[%s282_s2 + $0x60] sm:$0xff] %vm99_vm0, %v95_v33  ;;  %115 = vst.msk [vmem:[%s282_s2 + $0x70] sm:$0xff] %vm99_vm0, %v97_v38 }
   0xe   :  { %116 = vst.msk [vmem:[%s282_s2 + $0x78] sm:$0x1] %vm101_vm1, %v98_v39 }

</bundles_post_ra>
